<compile_context>
chip_gen: v7x
topology: tpu7x:2x2x1
jax: 0.10.0
libtpu: 0.0.40
codegen_flags: <defaults>
</compile_context>

<pallas_src>
import jax
import jax.numpy as jnp
from jax.experimental import pallas as pl
from jax.experimental.pallas import tpu as pltpu

LANE = 128  # TPU lane width; weight N-dim padded to a multiple of this.


def linear_kernel(x_ref, w_ref, b_ref, o_ref):
    # Hot path: one MXU matmul per batch tile + VPU bias add, all in VMEM.
    x = x_ref[...]                       # (TB, K)
    w = w_ref[...]                       # (K, N_pad)   resident across tiles
    b = b_ref[...]                       # (1, N_out)   resident across tiles
    acc = jnp.dot(x, w, preferred_element_type=jnp.float32)   # (TB, N_pad) f32
    n_out = o_ref.shape[-1]
    # Slice the valid logits lanes in-vreg; masked vst to the slim output tile.
    o_ref[...] = (acc[:, :n_out] + b).astype(o_ref.dtype)


def prepare_params(weight, bias, compute_dtype=jnp.float32):
    """One-time parameter prep (outside the per-step hot path).

    weight: (out_features, in_features)  -- PyTorch nn.Linear layout
    bias:   (out_features,)
    Returns (w_t_padded, bias2):
      w_t_padded: (in_features, N_pad), N_pad = 128-multiple, zero lane-padded
      bias2:      (1, out_features) float32 (f32 accumulate + f32 bias add)
    Use compute_dtype=jnp.bfloat16 ONLY if activations already arrive in bf16;
    otherwise the wrapper-side cast becomes an extra HBM pass.
    """
    out_f, in_f = weight.shape
    n_pad = max(LANE, pl.cdiv(out_f, LANE) * LANE)
    w_t = jnp.zeros((in_f, n_pad), compute_dtype)
    w_t = w_t.at[:, :out_f].set(weight.T.astype(compute_dtype))
    b2 = bias.astype(jnp.float32).reshape(1, out_f)
    return w_t, b2


def _pick_batch_tile(B, tile_b):
    """Pick the batch tile TB.

    - Tiny B (<= 512): single full-batch tile (full-extent block is legal).
    - Otherwise: cap at B//2 (rounded to an 8-row sublane multiple) so the
      grid has >= 2 steps and "parallel" semantics can shard across v7x's two
      TensorCores, then clamp to tile_b so the double-buffered x tiles stay
      inside the 32 MiB scoped VMEM budget (x tile occupies TB x 896 lanes in
      vregs, i.e. ~7.2 MiB at TB=2048 f32 -> ~14.5 MiB double-buffered).
    """
    if B <= 512:
        return B
    half = max(8, (B // 2) // 8 * 8)
    return min(tile_b, half)


def binary_classifier_forward(x, w_t, b2, out_features, *, tile_b=2048):
    """Equivalent of BinaryClassifier.forward: outputs = self.linear(x).

    x:   (B, in_features) activations (ideally already in w_t.dtype)
    w_t: (in_features, N_pad) pre-transposed, lane-padded weight
    b2:  (1, out_features) float32 bias
    Returns (B, out_features) float32 logits.
    """
    B, in_f = x.shape
    n_pad = w_t.shape[1]
    if x.dtype != w_t.dtype:
        # NOTE: this cast is a separate XLA HBM pass; push it upstream to the
        # data producer if you adopt bf16 compute. Kept only as a fallback.
        x = x.astype(w_t.dtype)

    TB = _pick_batch_tile(B, tile_b)
    grid = (pl.cdiv(B, TB),)

    x_itemsize = jnp.dtype(x.dtype).itemsize
    w_itemsize = jnp.dtype(w_t.dtype).itemsize
    cost = pl.CostEstimate(
        flops=2 * B * in_f * n_pad,  # padded MXU matmul
        bytes_accessed=(B * in_f * x_itemsize            # stream x (dominant)
                        + in_f * n_pad * w_itemsize      # weight, fetched once
                        + out_features * 4               # bias
                        + B * out_features * 4),         # slim logits writeback
        transcendentals=0,
    )

    out = pl.pallas_call(
        linear_kernel,
        out_shape=jax.ShapeDtypeStruct((B, out_features), jnp.float32),
        grid=grid,
        in_specs=[
            pl.BlockSpec((TB, in_f), lambda i: (i, 0)),        # stream x by tile
            pl.BlockSpec((in_f, n_pad), lambda i: (0, 0)),     # weight resident
            pl.BlockSpec((1, out_features), lambda i: (0, 0)),  # bias resident
        ],
        # Slim output block: last dim == full array dim (2), so legal; masked
        # vst + 8 B/row writeback hide under the x-read DMA.
        out_specs=pl.BlockSpec((TB, out_features), lambda i: (i, 0)),
        compiler_params=pltpu.CompilerParams(
            dimension_semantics=("parallel",),
            vmem_limit_bytes=32 << 20,   # explicit: v5e scoped default is 16 MiB
        ),
        cost_estimate=cost,
    )(x, w_t, b2)
    return out


if __name__ == "__main__":
    key = jax.random.PRNGKey(0)
    k_x, k_w, k_b = jax.random.split(key, 3)

    batch = 8
    in_features = 784     # 28*28, from the module's inputSize default
    out_features = 2      # outputSize default (binary classifier logits)

    # Deterministic parameter init mimicking torch.nn.Linear default
    # (uniform in [-1/sqrt(in_features), 1/sqrt(in_features)]).
    bound = 1.0 / jnp.sqrt(jnp.float32(in_features))
    weight = jax.random.uniform(
        k_w, (out_features, in_features), jnp.float32, -bound, bound)
    bias = jax.random.uniform(
        k_b, (out_features,), jnp.float32, -bound, bound)

    # Input: flattened "images" of shape (batch, 784), like images.reshape(-1, 28*28).
    x = jax.random.normal(k_x, (batch, in_features), jnp.float32)

    # One-time parameter prep (transpose + lane-pad), then the forward pass.
    w_t, b2 = prepare_params(weight, bias, compute_dtype=jnp.float32)
    out = binary_classifier_forward(x, w_t, b2, out_features)
    out = jax.block_until_ready(out)

    # Reference check in plain JAX (same math as torch.nn.Linear).
    ref = x @ weight.T + bias
    assert out.shape == (batch, out_features)
    assert jnp.allclose(out, ref, atol=1e-5, rtol=1e-5)

    # TODO(synk): training loop / CrossEntropyLoss / SGD / metrics from the
    # original module are host-side orchestration, not part of forward().
    print("KERNEL_OK")
</pallas_src>

<mosaic_0001>
module attributes {stable_mosaic.version = 11 : i64} {
  func.func @linear_kernel(%arg0: i32, %arg1: memref<8x784xf32, #tpu.memory_space<vmem>>, %arg2: memref<784x128xf32, #tpu.memory_space<vmem>>, %arg3: memref<1x2xf32, #tpu.memory_space<vmem>>, %arg4: memref<8x2xf32, #tpu.memory_space<vmem>>) attributes {dimension_semantics = [#tpu.dimension_semantics<parallel>], iteration_bounds = array<i64: 1>, scalar_prefetch = 0 : i64, scratch_operands = 0 : i64, tpu.core_type = #tpu.core_type<tc>, window_params = [{transform_indices = @transform_0, window_bounds = array<i64: 8, 784>}, {pipeline_mode = #tpu.pipeline_mode<synchronous>, transform_indices = @transform_1, window_bounds = array<i64: 784, 128>}, {pipeline_mode = #tpu.pipeline_mode<synchronous>, transform_indices = @transform_2, window_bounds = array<i64: 1, 2>}, {transform_indices = @transform_3, window_bounds = array<i64: 8, 2>}]} {
    %c0 = arith.constant 0 : index
    %c0_0 = arith.constant 0 : index
    %0 = vector.load %arg1[%c0, %c0_0] : memref<8x784xf32, #tpu.memory_space<vmem>>, vector<8x784xf32>
    %c0_1 = arith.constant 0 : index
    %c0_2 = arith.constant 0 : index
    %1 = vector.load %arg2[%c0_1, %c0_2] : memref<784x128xf32, #tpu.memory_space<vmem>>, vector<784x128xf32>
    %c0_3 = arith.constant 0 : index
    %c0_4 = arith.constant 0 : index
    %2 = vector.load %arg3[%c0_3, %c0_4] : memref<1x2xf32, #tpu.memory_space<vmem>>, vector<1x2xf32>
    %cst = arith.constant dense<0.000000e+00> : vector<8x128xf32>
    %3 = tpu.matmul %0, %1, %cst {dimension_numbers = #tpu.dot_dimension_numbers<[1], [0], [0], [1], [0, 0, 1, 1], [], []>} : vector<8x784xf32>, vector<784x128xf32>, vector<8x128xf32> -> vector<8x128xf32>
    %4 = vector.extract_strided_slice %3 {offsets = [0, 0], sizes = [8, 2], strides = [1, 1]} : vector<8x128xf32> to vector<8x2xf32>
    %5 = vector.broadcast %2 : vector<1x2xf32> to vector<8x2xf32>
    %6 = arith.addf %4, %5 : vector<8x2xf32>
    %c0_5 = arith.constant 0 : index
    %c0_6 = arith.constant 0 : index
    %7 = vector.load %arg4[%c0_5, %c0_6] : memref<8x2xf32, #tpu.memory_space<vmem>>, vector<8x2xf32>
    tpu.vector_store %arg4[%c0_5, %c0_6], %6 {strides = array<i32>} : memref<8x2xf32, #tpu.memory_space<vmem>>, vector<8x2xf32>,
    return
  }
  func.func @transform_0(%arg0: i32) -> (i32, i32) {
    %c0_i32 = arith.constant 0 : i32
    %c0_i32_0 = arith.constant 0 : i32
    return %arg0, %c0_i32 : i32, i32
  }
  func.func @transform_1(%arg0: i32) -> (i32, i32) {
    %c0_i32 = arith.constant 0 : i32
    %c0_i32_0 = arith.constant 0 : i32
    %c0_i32_1 = arith.constant 0 : i32
    return %c0_i32, %c0_i32_0 : i32, i32
  }
  func.func @transform_2(%arg0: i32) -> (i32, i32) {
    %c0_i32 = arith.constant 0 : i32
    %c0_i32_0 = arith.constant 0 : i32
    %c0_i32_1 = arith.constant 0 : i32
    return %c0_i32, %c0_i32_0 : i32, i32
  }
  func.func @transform_3(%arg0: i32) -> (i32, i32) {
    %c0_i32 = arith.constant 0 : i32
    %c0_i32_0 = arith.constant 0 : i32
    return %arg0, %c0_i32 : i32, i32
  }
}

</mosaic_0001>

<bundles_post_ra>
// kernel: tpu_custom_call.1
= control target key start
LH: loop header
LB: loop body
LE: loop exit
PB: predicated region body
PF: predicated region fallthrough
CT: control target
= control target key end

     0   :  { %8 = vsyncpa [#allocation3], 0  ;;  %s780_s0 = inlined_call_operand.hbm [shape: f32[8,784], index: 0, kind: input, shape index: {}]   ;;  %s781_s1 = inlined_call_operand.hbm [shape: f32[784,128], index: 1, kind: input, shape index: {}]   ;;  %s782_s2 = inlined_call_operand.vmem [shape: f32[1,2], index: 2, kind: input, shape index: {}]   ;;  %s783_s3 = inlined_call_operand.vmem [shape: f32[8,2], index: 3, kind: output, shape index: {}]  }
   0x1   :  { %9 = vsyncpa [#allocation5], 0  ;;  %s716_s12 = smov [#allocation2]   ;;  %s717_s14 = smov [#allocation4]  }
   0x2   :  { %s16_s13 = sshll.u32 %s716_s12, 4  ;;  %s25_s15 = sshll.u32 %s717_s14, 4  ;;  %s17_s13 = int_to_ptr.vmem [resolvable:$true] %s16_s13  ;;  %s743_s15 = int_to_ptr.vmem [resolvable:$true] %s25_s15 }
   0x3   :  { %s668_s18 = scalar_lea.hbm %s780_s0, 896 }
   0x4   :  { %p669_p0 = scmp.ne.s32.totalorder %s780_s0, %s668_s18  ;;  %p672_p1 = scmp.lt.u32.totalorder %s668_s18, %s780_s0 }
   0x6   :  { %p674_p2 = pnand %p672_p1, %p669_p0 }
   0x8   :  { %677 = shalt.err (!%p674_p2)
}
   0x9   :  { %s678_s23 = scalar_lea.vmem %s17_s13, 896  ;;  %p683_p4 = scmp.lt.s32.totalorder %s17_s13, %s17_s13 }
   0xa   :  { %p679_p3 = scmp.ne.s32.totalorder %s17_s13, %s678_s23  ;;  %p684_p5 = scmp.lt.s32.totalorder %s678_s23, %s678_s23 }
   0xc   :  { %p685_p6 = por %p684_p5, %p683_p4 }
   0xe   :  { %p686_p7 = pnand %p685_p6, %p679_p3 }
  0x10   :  { %689 = shalt.err (!%p686_p7)
}
  0x11   :  { %19 = dma.hbm_to_vmem [thread:$0]  %s780_s0, 896, %s17_s13, [#allocation3]  }
  0x12   :  { %s690_s28 = scalar_lea.hbm %s781_s1, 12544 }
  0x13   :  { %p691_p8 = scmp.ne.s32.totalorder %s781_s1, %s690_s28  ;;  %p694_p9 = scmp.lt.u32.totalorder %s690_s28, %s781_s1 }
  0x15   :  { %p696_p10 = pnand %p694_p9, %p691_p8 }
  0x17   :  { %699 = shalt.err (!%p696_p10)
}
  0x18   :  { %s700_s6 = scalar_lea.vmem %s743_s15, 12544  ;;  %p705_p12 = scmp.lt.s32.totalorder %s743_s15, %s743_s15 }
  0x19   :  { %p701_p11 = scmp.ne.s32.totalorder %s743_s15, %s700_s6  ;;  %p706_p13 = scmp.lt.s32.totalorder %s700_s6, %s700_s6 }
  0x1b   :  { %p707_p0 = por %p706_p13, %p705_p12 }
  0x1d   :  { %p708_p1 = pnand %p707_p0, %p701_p11 }
  0x1f   :  { %711 = shalt.err (!%p708_p1)
}
  0x20   :  { %s718_s0 = smov 128   ;;  %s719_s7 = smov 8  }
  0x21   :  { %31 = dma.hbm_to_vmem [thread:$0]  %s781_s1, 12544, %s743_s15, [#allocation5], %s718_s0, %s718_s0, %s719_s7  }
  0x22   :  { %712 = dma.done.wait [#allocation3], 896  }
  0x23   :  { %713 = vsyncadd [#allocation3], 4294966400 }
  0x24   :  { %714 = dma.done.wait [#allocation5], 12544  }
  0x25   :  { %715 = vsyncadd [#allocation5], 4294954752  ;;  %v63_v0 = vld [vmem:[#allocation4 + $0x80] sm:$0xff]  ;;  %v64_v1 = vld [vmem:[#allocation4 + $0x88] sm:$0xff]  ;;  %vm721_vm0 = vmmov 0   ;;  %vm146_vm1 = vcmask 130048  }
  0x26   :  { %v95_v2 = vld [vmem:[#allocation4 + $0x180] sm:$0xff]  ;;  %v562_v3 = vpack.c.bf16 %v64_v1, %v63_v0  ;;  %v96_v4 = vld [vmem:[#allocation4 + $0x188] sm:$0xff]  ;;  %v65_v11 = vld [vmem:[#allocation4 + $0x90] sm:$0xff]  ;;  %vm437_vm2 = vcmask 15360  }
  0x27   :  { %v47_v5 = vld [vmem:[#allocation4] sm:$0xff]  ;;  %v48_v6 = vld [vmem:[#allocation4 + $0x8] sm:$0xff]  ;;  %v594_v7 = vpack.c.bf16 %v96_v4, %v95_v2  ;;  %v66_v13 = vld [vmem:[#allocation4 + $0x98] sm:$0xff] }
  0x28   :  { %v564_v8 = vpack.c.bf16 %v48_v6, %v47_v5  ;;  %v79_v9 = vld [vmem:[#allocation4 + $0x100] sm:$0xff]  ;;  %v80_v10 = vld [vmem:[#allocation4 + $0x108] sm:$0xff]  ;;  %563 = vmatprep.subr.bf16.mxu0 %v562_v3  ;;  %v97_v14 = vld [vmem:[#allocation4 + $0x190] sm:$0xff]  ;;  %v566_v16 = vpack.c.bf16 %v66_v13, %v65_v11 }
  0x29   :  { %v596_v12 = vpack.c.bf16 %v80_v10, %v79_v9  ;;  %v98_v15 = vld [vmem:[#allocation4 + $0x198] sm:$0xff]  ;;  %595 = vmatprep.subr.bf16.mxu1 %v594_v7  ;;  %v49_v18 = vld [vmem:[#allocation4 + $0x10] sm:$0xff]  ;;  %v67_v23 = vld [vmem:[#allocation4 + $0xa0] sm:$0xff] }
  0x2a   :  { %565 = vmatpush3.bf16.msra.mxu0 %v564_v8  ;;  %v598_v17 = vpack.c.bf16 %v98_v15, %v97_v14  ;;  %v50_v19 = vld [vmem:[#allocation4 + $0x18] sm:$0xff]  ;;  %v81_v20 = vld [vmem:[#allocation4 + $0x110] sm:$0xff]  ;;  %v68_v24 = vld [vmem:[#allocation4 + $0xa8] sm:$0xff] }
  0x2b   :  { %597 = vmatpush3.bf16.msra.mxu1 %v596_v12  ;;  %v568_v21 = vpack.c.bf16 %v50_v19, %v49_v18  ;;  %v82_v22 = vld [vmem:[#allocation4 + $0x118] sm:$0xff]  ;;  %567 = vmatprep.subr.bf16.mxu0 %v566_v16  ;;  %v570_v26 = vpack.c.bf16 %v68_v24, %v67_v23  ;;  %v99_v27 = vld [vmem:[#allocation4 + $0x1a0] sm:$0xff]  ;;  %v100_v28 = vld [vmem:[#allocation4 + $0x1a8] sm:$0xff] }
  0x2c   :  { %599 = vmatprep.subr.bf16.mxu1 %v598_v17  ;;  %v600_v25 = vpack.c.bf16 %v82_v22, %v81_v20  ;;  %v51_v29 = vld [vmem:[#allocation4 + $0x20] sm:$0xff]  ;;  %v602_v30 = vpack.c.bf16 %v100_v28, %v99_v27  ;;  %v52_v31 = vld [vmem:[#allocation4 + $0x28] sm:$0xff]  ;;  %v69_v35 = vld [vmem:[#allocation4 + $0xb0] sm:$0xff] }
  0x2d   :  { %v83_v32 = vld [vmem:[#allocation4 + $0x120] sm:$0xff]  ;;  %v84_v33 = vld [vmem:[#allocation4 + $0x128] sm:$0xff]  ;;  %v572_v34 = vpack.c.bf16 %v52_v31, %v51_v29  ;;  %v70_v36 = vld [vmem:[#allocation4 + $0xb8] sm:$0xff] }
  0x2e   :  { %569 = vmatpush3.bf16.msra.mxu0 %v568_v21  ;;  %v101_v37 = vld [vmem:[#allocation4 + $0x1b0] sm:$0xff]  ;;  %v604_v38 = vpack.c.bf16 %v84_v33, %v83_v32  ;;  %v574_v39 = vpack.c.bf16 %v70_v36, %v69_v35  ;;  %v102_v40 = vld [vmem:[#allocation4 + $0x1b8] sm:$0xff]  ;;  %v71_v46 = vld [vmem:[#allocation4 + $0xc0] sm:$0xff] }
  0x2f   :  { %601 = vmatpush3.bf16.msra.mxu1 %v600_v25  ;;  %571 = vmatprep.subr.bf16.mxu0 %v570_v26  ;;  %v53_v41 = vld [vmem:[#allocation4 + $0x30] sm:$0xff]  ;;  %v54_v42 = vld [vmem:[#allocation4 + $0x38] sm:$0xff]  ;;  %v606_v43 = vpack.c.bf16 %v102_v40, %v101_v37  ;;  %v72_v47 = vld [vmem:[#allocation4 + $0xc8] sm:$0xff] }
  0x30   :  { %603 = vmatprep.subr.bf16.mxu1 %v602_v30  ;;  %v85_v44 = vld [vmem:[#allocation4 + $0x130] sm:$0xff]  ;;  %v86_v45 = vld [vmem:[#allocation4 + $0x138] sm:$0xff]  ;;  %v103_v48 = vld [vmem:[#allocation4 + $0x1c0] sm:$0xff]  ;;  %v576_v50 = vpack.c.bf16 %v54_v42, %v53_v41  ;;  %v578_v52 = vpack.c.bf16 %v72_v47, %v71_v46 }
  0x31   :  { %v104_v49 = vld [vmem:[#allocation4 + $0x1c8] sm:$0xff]  ;;  %v608_v51 = vpack.c.bf16 %v86_v45, %v85_v44  ;;  %v55_v53 = vld [vmem:[#allocation4 + $0x40] sm:$0xff]  ;;  %v73_v58 = vld [vmem:[#allocation4 + $0xd0] sm:$0xff] }
  0x32   :  { %573 = vmatpush3.bf16.msra.mxu0 %v572_v34  ;;  %v56_v54 = vld [vmem:[#allocation4 + $0x48] sm:$0xff]  ;;  %v87_v55 = vld [vmem:[#allocation4 + $0x140] sm:$0xff]  ;;  %v610_v56 = vpack.c.bf16 %v104_v49, %v103_v48  ;;  %v74_v59 = vld [vmem:[#allocation4 + $0xd8] sm:$0xff] }
  0x33   :  { %605 = vmatpush3.bf16.msra.mxu1 %v604_v38  ;;  %575 = vmatprep.subr.bf16.mxu0 %v574_v39  ;;  %v88_v57 = vld [vmem:[#allocation4 + $0x148] sm:$0xff]  ;;  %v105_v60 = vld [vmem:[#allocation4 + $0x1d0] sm:$0xff]  ;;  %v106_v61 = vld [vmem:[#allocation4 + $0x1d8] sm:$0xff]  ;;  %v580_v62 = vpack.c.bf16 %v56_v54, %v55_v53  ;;  %v582_v0 = vpack.c.bf16 %v74_v59, %v73_v58 }
  0x34   :  { %607 = vmatprep.subr.bf16.mxu1 %v606_v43  ;;  %v612_v63 = vpack.c.bf16 %v88_v57, %v87_v55  ;;  %v57_v1 = vld [vmem:[#allocation4 + $0x50] sm:$0xff]  ;;  %v58_v2 = vld [vmem:[#allocation4 + $0x58] sm:$0xff]  ;;  %v614_v4 = vpack.c.bf16 %v106_v61, %v105_v60  ;;  %v75_v6 = vld [vmem:[#allocation4 + $0xe0] sm:$0xff]  ;;  %v722_v60 = vmov 0.0  }
  0x35   :  { %v89_v3 = vld [vmem:[#allocation4 + $0x150] sm:$0xff]  ;;  %v90_v5 = vld [vmem:[#allocation4 + $0x158] sm:$0xff]  ;;  %v76_v7 = vld [vmem:[#allocation4 + $0xe8] sm:$0xff]  ;;  %v584_v10 = vpack.c.bf16 %v58_v2, %v57_v1 }
  0x36   :  { %577 = vmatpush3.bf16.msra.mxu0 %v576_v50  ;;  %v107_v8 = vld [vmem:[#allocation4 + $0x1e0] sm:$0xff]  ;;  %v108_v9 = vld [vmem:[#allocation4 + $0x1e8] sm:$0xff]  ;;  %v616_v13 = vpack.c.bf16 %v90_v5, %v89_v3  ;;  %v586_v14 = vpack.c.bf16 %v76_v7, %v75_v6  ;;  %v41_v16 = vld [vmem:[#allocation2 + $0x8] sm:$0xff]  ;;  %v720_v50 = vmov 0.0|0.0  }
  0x37   :  { %609 = vmatpush3.bf16.msra.mxu1 %v608_v51  ;;  %579 = vmatprep.subr.bf16.mxu0 %v578_v52  ;;  %v59_v11 = vld [vmem:[#allocation4 + $0x60] sm:$0xff]  ;;  %v60_v12 = vld [vmem:[#allocation4 + $0x68] sm:$0xff]  ;;  %v618_v18 = vpack.c.bf16 %v108_v9, %v107_v8  ;;  %v77_v20 = vld [vmem:[#allocation4 + $0xf0] sm:$0xff] }
  0x38   :  { %611 = vmatprep.subr.bf16.mxu1 %v610_v56  ;;  %v91_v15 = vld [vmem:[#allocation4 + $0x160] sm:$0xff]  ;;  %v92_v19 = vld [vmem:[#allocation4 + $0x168] sm:$0xff]  ;;  %v78_v21 = vld [vmem:[#allocation4 + $0xf8] sm:$0xff]  ;;  %214 = vmatprep.mubr.f32.mxu0 %v41_v16  ;;  %v588_v24 = vpack.c.bf16 %v60_v12, %v59_v11 }
  0x39   :  { %v43_v17 = vld [vmem:[#allocation2 + $0x18] sm:$0xff]  ;;  %v109_v22 = vld [vmem:[#allocation4 + $0x1f0] sm:$0xff]  ;;  %v110_v23 = vld [vmem:[#allocation4 + $0x1f8] sm:$0xff]  ;;  %v620_v25 = vpack.c.bf16 %v92_v19, %v91_v15  ;;  %v590_v26 = vpack.c.bf16 %v78_v21, %v77_v20 }
  0x3a   :  { %581 = vmatpush3.bf16.msra.mxu0 %v580_v62  ;;  %284 = vmatprep.mubr.f32.mxu1 %v43_v17  ;;  %v61_v27 = vld [vmem:[#allocation4 + $0x70] sm:$0xff]  ;;  %v62_v28 = vld [vmem:[#allocation4 + $0x78] sm:$0xff]  ;;  %v622_v30 = vpack.c.bf16 %v110_v23, %v109_v22  ;;  %v127_v32 = vld [vmem:[#allocation4 + $0x280] sm:$0xff] }
  0x3b   :  { %613 = vmatpush3.bf16.msra.mxu1 %v612_v63  ;;  %583 = vmatprep.subr.bf16.mxu0 %v582_v0  ;;  %v93_v29 = vld [vmem:[#allocation4 + $0x170] sm:$0xff]  ;;  %v94_v31 = vld [vmem:[#allocation4 + $0x178] sm:$0xff]  ;;  %v128_v33 = vld [vmem:[#allocation4 + $0x288] sm:$0xff]  ;;  %v592_v34 = vpack.c.bf16 %v62_v28, %v61_v27 }
  0x3c   :  { %615 = vmatprep.subr.bf16.mxu1 %v614_v4  ;;  %v624_v35 = vpack.c.bf16 %v94_v31, %v93_v29  ;;  %v626_v36 = vpack.c.bf16 %v128_v33, %v127_v32  ;;  %v111_v37 = vld [vmem:[#allocation4 + $0x200] sm:$0xff]  ;;  %v112_v38 = vld [vmem:[#allocation4 + $0x208] sm:$0xff]  ;;  %v129_v39 = vld [vmem:[#allocation4 + $0x290] sm:$0xff] }
  0x3d   :  { %v130_v40 = vld [vmem:[#allocation4 + $0x298] sm:$0xff]  ;;  %v40_v41 = vld [vmem:[#allocation2] sm:$0xff]  ;;  %v628_v43 = vpack.c.bf16 %v112_v38, %v111_v37  ;;  %v113_v44 = vld [vmem:[#allocation4 + $0x210] sm:$0xff] }
  0x3e   :  { %585 = vmatpush3.bf16.msra.mxu0 %v584_v10  ;;  %v42_v42 = vld [vmem:[#allocation2 + $0x10] sm:$0xff]  ;;  %v630_v45 = vpack.c.bf16 %v130_v40, %v129_v39  ;;  %v131_v47 = vld [vmem:[#allocation4 + $0x2a0] sm:$0xff]  ;;  %v132_v48 = vld [vmem:[#allocation4 + $0x2a8] sm:$0xff] }
  0x3f   :  { %617 = vmatpush3.bf16.msra.mxu1 %v616_v13  ;;  %587 = vmatprep.subr.bf16.mxu0 %v586_v14  ;;  %v114_v46 = vld [vmem:[#allocation4 + $0x218] sm:$0xff]  ;;  %v45_v49 = vld [vmem:[#allocation2 + $0x28] sm:$0xff]  ;;  %v143_v51 = vld [vmem:[#allocation4 + $0x300] sm:$0xff]  ;;  %v634_v55 = vpack.c.bf16 %v132_v48, %v131_v47 }
  0x40   :  { %619 = vmatprep.subr.bf16.mxu1 %v618_v18  ;;  %v144_v52 = vld [vmem:[#allocation4 + $0x308] sm:$0xff]  ;;  %v632_v54 = vpack.c.bf16 %v114_v46, %v113_v44  ;;  %v115_v56 = vld [vmem:[#allocation4 + $0x220] sm:$0xff]  ;;  %v133_v58 = vld [vmem:[#allocation4 + $0x2b0] sm:$0xff] }
  0x41   :  { %v659_v53 = vpack.c.bf16 %v144_v52, %v143_v51  ;;  %v116_v57 = vld [vmem:[#allocation4 + $0x228] sm:$0xff]  ;;  %v134_v59 = vld [vmem:[#allocation4 + $0x2b8] sm:$0xff]  ;;  %v117_v0 = vld [vmem:[#allocation4 + $0x230] sm:$0xff] }
  0x42   :  { %589 = vmatpush3.bf16.msra.mxu0 %v588_v24  ;;  %v46_v61 = vld [vmem:[#allocation2 + $0x30] sm:$0xff]  ;;  %v636_v62 = vpack.c.bf16 %v116_v57, %v115_v56  ;;  %v638_v63 = vpack.c.bf16 %v134_v59, %v133_v58  ;;  %v135_v2 = vld [vmem:[#allocation4 + $0x2c0] sm:$0xff]  ;;  %v136_v3 = vld [vmem:[#allocation4 + $0x2c8] sm:$0xff] }
  0x43   :  { %621 = vmatpush3.bf16.msra.mxu1 %v620_v25  ;;  %591 = vmatprep.subr.bf16.mxu0 %v590_v26  ;;  %v118_v1 = vld [vmem:[#allocation4 + $0x238] sm:$0xff]  ;;  %v642_v5 = vpack.c.bf16 %v136_v3, %v135_v2  ;;  %v119_v6 = vld [vmem:[#allocation4 + $0x240] sm:$0xff]  ;;  %v120_v7 = vld [vmem:[#allocation4 + $0x248] sm:$0xff] }
  0x44   :  { %623 = vmatprep.subr.bf16.mxu1 %v622_v30  ;;  %v640_v4 = vpack.c.bf16 %v118_v1, %v117_v0  ;;  %v137_v8 = vld [vmem:[#allocation4 + $0x2d0] sm:$0xff]  ;;  %v138_v9 = vld [vmem:[#allocation4 + $0x2d8] sm:$0xff]  ;;  %v644_v10 = vpack.c.bf16 %v120_v7, %v119_v6  ;;  %v139_v14 = vld [vmem:[#allocation4 + $0x2e0] sm:$0xff] }
  0x45   :  { %v646_v11 = vpack.c.bf16 %v138_v9, %v137_v8  ;;  %v121_v12 = vld [vmem:[#allocation4 + $0x250] sm:$0xff]  ;;  %v122_v13 = vld [vmem:[#allocation4 + $0x258] sm:$0xff]  ;;  %v140_v15 = vld [vmem:[#allocation4 + $0x2e8] sm:$0xff] }
  0x46   :  { %593 = vmatpush3.bf16.msra.mxu0 %v592_v34  ;;  %v648_v16 = vpack.c.bf16 %v122_v13, %v121_v12  ;;  %v650_v17 = vpack.c.bf16 %v140_v15, %v139_v14  ;;  %v123_v18 = vld [vmem:[#allocation4 + $0x260] sm:$0xff]  ;;  %v124_v19 = vld [vmem:[#allocation4 + $0x268] sm:$0xff]  ;;  %v141_v20 = vld [vmem:[#allocation4 + $0x2f0] sm:$0xff] }
  0x47   :  { %625 = vmatpush3.bf16.msra.mxu1 %v624_v35  ;;  %627 = vmatprep.subr.bf16.mxu0 %v626_v36  ;;  %v142_v21 = vld [vmem:[#allocation4 + $0x2f8] sm:$0xff]  ;;  %v652_v22 = vpack.c.bf16 %v124_v19, %v123_v18  ;;  %v125_v24 = vld [vmem:[#allocation4 + $0x270] sm:$0xff]  ;;  %v44_v27 = vld [vmem:[#allocation2 + $0x20] sm:$0xff] }
  0x48   :  { %658 = vmatprep.subr.bf16.mxu1 %v720_v50  ;;  %v654_v23 = vpack.c.bf16 %v142_v21, %v141_v20  ;;  %v126_v25 = vld [vmem:[#allocation4 + $0x278] sm:$0xff] }
  0x49   :  { %215 = vmatmul.mubr.f32.vlgmr.msra.gmra.mrb[0].mxu0 %v40_v41  ;;  %v656_v26 = vpack.c.bf16 %v126_v25, %v125_v24  ;;  %v446_v41 = vld [vmem:[%s782_s2] ss:$0 sm:$0xff] }
  0x4a   :  { %285 = vmatmul.mubr.f32.vlgmr.msra.gmra.mrb[0].mxu1 %v42_v42  ;;  %629 = vmatpush3.bf16.msra.mxu0 %v628_v43 }
  0x4b   :  { %631 = vmatprep.subr.bf16.mxu0 %v630_v45  ;;  %354 = vmatprep.mubr.f32.mxu0 %v45_v49 }
  0x4c   :  { %660 = vmatpush3.bf16.msra.mxu1 %v659_v53  ;;  %559 = vmatprep.mubr.msk.f32.mxu1 %vm721_vm0, %v722_v60 }
  0x4e   :  { %633 = vmatpush3.bf16.msra.mxu0 %v632_v54 }
  0x4f   :  { %635 = vmatprep.subr.bf16.mxu0 %v634_v55  ;;  %560 = vmatmul.mubr.msk.f32.vlgmr.msra.gmra.mrb[2].mxu1 %vm146_vm1, %v46_v61 }
  0x52   :  { %637 = vmatpush3.bf16.msra.mxu0 %v636_v62 }
  0x53   :  { %639 = vmatprep.subr.bf16.mxu0 %v638_v63 }
  0x56   :  { %641 = vmatpush3.bf16.msra.mxu0 %v640_v4 }
  0x57   :  { %643 = vmatprep.subr.bf16.mxu0 %v642_v5 }
  0x5a   :  { %645 = vmatpush3.bf16.msra.mxu0 %v644_v10 }
  0x5b   :  { %647 = vmatprep.subr.bf16.mxu0 %v646_v11 }
  0x5e   :  { %649 = vmatpush3.bf16.msra.mxu0 %v648_v16 }
  0x5f   :  { %651 = vmatprep.subr.bf16.mxu0 %v650_v17 }
  0x62   :  { %653 = vmatpush3.bf16.msra.mxu0 %v652_v22 }
  0x63   :  { %655 = vmatprep.subr.bf16.mxu0 %v654_v23 }
  0x66   :  { %657 = vmatpush3.bf16.msra.mxu0 %v656_v26 }
  0x69   :  { %355 = vmatmul.mubr.f32.vlgmr.msra.gmra.mrb[2].mxu0 %v44_v27 }
 0x11c   :  { %v479_v28 = vpop.f32.mrb[0].mxu0 }
 0x11d   :  { %v514_v29 = vpop.f32.mrb[0].mxu1  ;;  %v480_v30 = vpop.f32.mrb[1].mxu0 }
 0x11e   :  { %v481_v31 = vadd.f32 %v480_v30, %v479_v28  ;;  %v515_v32 = vpop.f32.mrb[1].mxu1 }
 0x11f   :  { %v516_v33 = vadd.f32 %v515_v32, %v514_v29 }
 0x121   :  { %v287_v34 = vadd.f32 %v516_v33, %v481_v31 }
 0x122   :  { %v426_v35 = vpop.f32.mrb[2].mxu1 }
 0x123   :  { %v561_v36 = vpop.f32.mrb[3].mxu1 }
 0x13c   :  { %v549_v37 = vpop.f32.mrb[2].mxu0 }
 0x13d   :  { %v550_v38 = vpop.f32.mrb[3].mxu0 }
 0x13e   :  { %v551_v39 = vadd.f32 %v550_v38, %v549_v37 }
 0x140   :  { %v357_v40 = vadd.f32 %v551_v39, %v287_v34 }
 0x142   :  { %v427_v42 = vadd.f32 %v426_v35, %v357_v40 }
 0x144   :  { %v436_v43 = vadd.f32 %v446_v41, %v427_v42 }
 0x146   :  { %438 = vst.msk [vmem:[%s783_s3] sm:$0xff] %vm437_vm2, %v436_v43 }
 0x147   :  { %443 = vsyncpa [#allocation3], 1 }
 0x148   :  { %444 = vsyncpa [#allocation5], 1 }

</bundles_post_ra>
